<compile_context>
chip_gen: v7x
topology: tpu7x:2x2x1
jax: 0.10.0
libtpu: 0.0.40
codegen_flags: <defaults>
</compile_context>

<pallas_src>
from functools import partial

import jax
import jax.numpy as jnp
from jax.experimental import pallas as pl
from jax.experimental.pallas import tpu as pltpu


def identity(x: jax.Array) -> jax.Array:
    """Identity mapping — the optimal implementation does no HBM traffic."""
    return x


def _dma_copy_kernel(x_hbm, o_hbm, sem, *, n_chunks: int):
    """Copy x_hbm -> o_hbm with direct HBM->HBM DMAs (no VMEM staging)."""
    if n_chunks == 1:
        cp = pltpu.make_async_copy(x_hbm, o_hbm, sem.at[0])
        cp.start()
        cp.wait()
        return
    # Issue all chunk DMAs first (multiple outstanding descriptors), then wait.
    copies = [
        pltpu.make_async_copy(x_hbm.at[c], o_hbm.at[c], sem.at[c])
        for c in range(n_chunks)
    ]
    for cp in copies:
        cp.start()
    for cp in copies:
        cp.wait()


def _pick_chunks(n_elems: int, itemsize: int) -> int:
    """Number of concurrent DMA chunks: several in flight for big copies,
    but each chunk >= ~1 MiB so descriptor overhead stays negligible."""
    min_chunk_bytes = 1 << 20
    for c in (8, 4, 2):
        if n_elems % c == 0 and (n_elems // c) * itemsize >= min_chunk_bytes:
            return c
    return 1


def identity_copy(x: jax.Array) -> jax.Array:
    """Materialize an independent copy of `x` via a Pallas TPU kernel.

    Pure HBM-bandwidth-bound: one (or a few concurrent) HBM->HBM DMAs.
    """
    orig_shape = x.shape
    dtype = x.dtype
    n = x.size
    if n == 0:
        return x  # nothing to copy

    itemsize = jnp.dtype(dtype).itemsize
    n_chunks = _pick_chunks(n, itemsize)
    x2 = x.reshape(n_chunks, n // n_chunks)

    out2 = pl.pallas_call(
        partial(_dma_copy_kernel, n_chunks=n_chunks),
        out_shape=jax.ShapeDtypeStruct(x2.shape, dtype),
        # Raw HBM refs in the kernel body; DMA issued manually.
        in_specs=[pl.BlockSpec(memory_space=pl.ANY)],
        out_specs=pl.BlockSpec(memory_space=pl.ANY),
        scratch_shapes=[pltpu.SemaphoreType.DMA((n_chunks,))],
        cost_estimate=pl.CostEstimate(
            flops=0, transcendentals=0, bytes_accessed=2 * n * itemsize
        ),
    )(x2)

    return out2.reshape(orig_shape)


if __name__ == "__main__":
    key = jax.random.PRNGKey(0)
    # Small NCHW input consistent with typical usage of this module.
    x = jax.random.normal(key, (2, 4, 16, 16), dtype=jnp.float32)

    # Fast path: what production code should use (no copy at all).
    y_fast = identity(x)
    assert y_fast.shape == x.shape and y_fast.dtype == x.dtype
    assert bool(jnp.all(y_fast == x)), "fast-path identity differs from input"

    # Explicit Pallas DMA-copy kernel (exercised here to validate the kernel path).
    y = identity_copy(x)
    y = jax.block_until_ready(y)

    assert y.shape == x.shape, f"shape mismatch: {y.shape} vs {x.shape}"
    assert y.dtype == x.dtype, f"dtype mismatch: {y.dtype} vs {x.dtype}"
    assert bool(jnp.all(y == x)), "identity output differs from input"
    # No donation: the original input must still be readable and unchanged.
    assert bool(jnp.all(x == y_fast)), "input was invalidated by identity_copy"

    print("KERNEL_OK")
</pallas_src>

<mosaic_0001>
module attributes {stable_mosaic.version = 11 : i64} {
  func.func @_dma_copy_kernel(%arg0: memref<1x2048xf32, #tpu.memory_space<any>>, %arg1: memref<1x2048xf32, #tpu.memory_space<any>>, %arg2: memref<1x!tpu.dma_semaphore, #tpu.memory_space<semaphore_mem>>) attributes {dimension_semantics = [], scalar_prefetch = 0 : i64, scratch_operands = 1 : i64, tpu.core_type = #tpu.core_type<tc>} {
    %c0_i32 = arith.constant 0 : i32
    %0 = tpu.memref_slice %arg2[%c0_i32] : memref<1x!tpu.dma_semaphore, #tpu.memory_space<semaphore_mem>> -> memref<1x!tpu.dma_semaphore, #tpu.memory_space<semaphore_mem>>
    %1 = tpu.memref_squeeze %0 : memref<1x!tpu.dma_semaphore, #tpu.memory_space<semaphore_mem>> -> memref<!tpu.dma_semaphore, #tpu.memory_space<semaphore_mem>>
    tpu.enqueue_dma source(%arg0 : memref<1x2048xf32, #tpu.memory_space<any>>) target(%arg1 : memref<1x2048xf32, #tpu.memory_space<any>>) target_semaphore(%1 : memref<!tpu.dma_semaphore, #tpu.memory_space<semaphore_mem>>)
    %c0_i32_0 = arith.constant 0 : i32
    %2 = tpu.memref_slice %arg2[%c0_i32_0] : memref<1x!tpu.dma_semaphore, #tpu.memory_space<semaphore_mem>> -> memref<1x!tpu.dma_semaphore, #tpu.memory_space<semaphore_mem>>
    %3 = tpu.memref_squeeze %2 : memref<1x!tpu.dma_semaphore, #tpu.memory_space<semaphore_mem>> -> memref<!tpu.dma_semaphore, #tpu.memory_space<semaphore_mem>>
    tpu.wait_dma2 semaphore(%3 : memref<!tpu.dma_semaphore, #tpu.memory_space<semaphore_mem>>) src(%arg0 : memref<1x2048xf32, #tpu.memory_space<any>>) dst(%arg1 : memref<1x2048xf32, #tpu.memory_space<any>>)
    return
  }
}

</mosaic_0001>

<bundles_post_ra>
// kernel: tpu_custom_call.1
= control target key start
LH: loop header
LB: loop body
LE: loop exit
PB: predicated region body
PF: predicated region fallthrough
CT: control target
= control target key end

     0   :  { %s34_s6 = smov [#allocation2]   ;;  %s35_s7 = smov [#allocation3]   ;;  %s53_s0 = inlined_call_operand.hbm [shape: f32[1,2048], index: 0, kind: input, shape index: {}]   ;;  %s54_s1 = inlined_call_operand.hbm [shape: f32[1,2048], index: 1, kind: output, shape index: {}]  }
   0x1   :  { %s36_s8 = smov 0  }
   0x2   :  { %18 = dma.general %s53_s0, 256, %s54_s1, %s34_s6, %s35_s7, [#allocation4], %s36_s8, 0  }
   0x3   :  { %32 = dma.done.wait [#allocation2], 256 }
   0x4   :  { %33 = vsyncadd [#allocation2], 4294967040 }
   0x5   :  { %22 = vsyncmov [#allocation2] }
   0x8   :  { %s23_s13 = vpop.sfrf %22 }
   0x9   :  { %p28_p0 = scmp.ne.s32.totalorder %s23_s13, 0 }
   0xb   :  { %27 = shalt.err (%p28_p0)  }

</bundles_post_ra>
